<compile_context>
chip_gen: v6e
topology: v6e:2x2x1
jax: 0.10.0
libtpu: 0.0.40
codegen_flags: <defaults>
</compile_context>

<pallas_src>
import functools

import jax
import jax.numpy as jnp
from jax import lax
from jax.experimental import pallas as pl
from jax.experimental.pallas import tpu as pltpu

# PAD is a module-level constant in the original file; convention is PAD == 0.
PAD = 0
_MIB = 1024 * 1024


def _make_loss_kernel(k, d):
    """grid = (num_splits, steps_per_split); axis 1 is the sequential reduction.

    logits_ref: (TM, W)     logits tile, native dtype (W = k * d)
    tgt_ref   : (TM, 1)     int32; k == 1 -> target column (-1 if masked),
                            k > 1  -> k 8-bit packed column fields (255 = masked)
    parts_ref : (1, 8, 128) f32; element [0, 0, 0] = this split's picked sum
    acc_ref   : (1, W) / (1, 1) f32 VMEM accumulator (persists across axis 1)
    """
    log2d = max(d.bit_length() - 1, 0)

    def kernel(logits_ref, tgt_ref, parts_ref, acc_ref):
        i = pl.program_id(1)

        @pl.when(i == 0)
        def _init():
            acc_ref[...] = jnp.zeros_like(acc_ref)

        o = logits_ref[...]                                  # (TM, W) native dtype
        pk = tgt_ref[...]                                    # (TM, 1) int32
        col = lax.broadcasted_iota(jnp.int32, o.shape, 1)    # (TM, W) lane index

        if k == 1:
            # One target per row => at most one nonzero per row after the select,
            # so the native-dtype lane reduction is exact.
            onehot = pk == col
            masked = jnp.where(onehot, o, jnp.zeros_like(o))        # native dtype
            picked = jnp.sum(masked, axis=-1, keepdims=True)        # (TM, 1) exact
            acc_ref[...] += jnp.sum(picked.astype(jnp.float32),
                                    axis=0, keepdims=True)          # (1, 1)
        else:
            # k tokens per 128-lane row.  Lane c belongs to token segment c // d;
            # extract that token's packed 8-bit target column and compare.
            shifts = jnp.left_shift(jnp.right_shift(col, log2d), 3)  # 8 * (c // d)
            idx = jnp.bitwise_and(jnp.right_shift(pk, shifts), 255)
            onehot = idx == col                                      # (TM, W)
            masked = jnp.where(onehot, o, jnp.zeros_like(o))         # native select
            masked = masked.astype(jnp.float32)                      # exact converts
            acc_ref[...] += jnp.sum(masked, axis=0, keepdims=True)   # (1, W)

        @pl.when(i == pl.num_programs(1) - 1)
        def _finalize():
            total = jnp.sum(acc_ref[...])
            row = lax.broadcasted_iota(jnp.int32, (8, 128), 0)
            lane = lax.broadcasted_iota(jnp.int32, (8, 128), 1)
            parts_ref[0, :, :] = jnp.where((row == 0) & (lane == 0), total, 0.0)

    return kernel


@functools.lru_cache(maxsize=1)
def _tpu_plan():
    """(num_splits, vmem_limit_bytes, tile_budget_bytes) for the local TPU gen."""
    kind = ""
    try:
        kind = jax.devices()[0].device_kind.lower()
    except Exception:
        pass
    is_v7 = ("v7" in kind) or ("7x" in kind)

    vmem_cap = None
    try:
        vmem_cap = int(pltpu.get_tpu_info().vmem_capacity_bytes)
    except Exception:
        vmem_cap = None
    if vmem_cap is None:
        if is_v7:
            vmem_cap = 64 * _MIB
        elif ("v4" in kind) or ("v5" in kind) or ("v6" in kind):
            vmem_cap = 128 * _MIB
        else:
            vmem_cap = 64 * _MIB                      # conservative default

    num_splits = 2 if is_v7 else 1                    # one stream per TC on v7x only
    vmem_limit = int(min(64 * _MIB, vmem_cap // 2))   # explicit: v5e default is 16 MiB
    tile_budget = (3 * vmem_limit) // 4               # headroom inside the scoped limit
    return num_splits, vmem_limit, tile_budget


def _pick_rows(w_cols, itemsize, n_rows, tile_budget, tm_override):
    """Row-tile size: biggest multiple of 8 that keeps the whole pipeline in VMEM."""
    if tm_override is not None:
        tm = max(8, (int(tm_override) // 8) * 8)
    else:
        lane_w = max(int(w_cols), 128)                # VMEM lanes pad to 128
        # double-buffered logits + double-buffered lane-padded (rows,1) targets
        # + headroom for the full-width one-hot temporaries.
        per_row = 2 * w_cols * itemsize + 6 * lane_w * 4 + 3 * 512
        tm = max(8, ((tile_budget // per_row) // 8) * 8)
    tm = min(tm, ((n_rows + 7) // 8) * 8)             # never larger than the data
    return max(tm, 8)


def _loss_parts(o_flat, t, d, k, tm, num_splits):
    """Runs the kernel and returns per-split partial sums, shape (S, 8, 128)."""
    n = o_flat.shape[0]
    plan_splits, vmem_limit, tile_budget = _tpu_plan()
    if num_splits is None:
        num_splits = plan_splits

    if k > 1:
        n_p, w = n // k, k * d
        o2 = o_flat.reshape(n_p, w)                   # zero-copy lane packing
        t2 = t.reshape(n_p, k)
        valid = (t2 > PAD) & (t2 < d)
        off = (jnp.arange(k, dtype=jnp.int32) * d)[None, :]
        gcol = jnp.where(valid, t2 + off, 255)        # 8-bit packed-row column
        packed = jnp.zeros((n_p,), jnp.int32)
        for j in range(k):
            packed = jnp.bitwise_or(packed, jnp.left_shift(gcol[:, j], 8 * j))
    else:
        n_p, w = n, d
        o2 = o_flat
        packed = jnp.where((t > PAD) & (t < d), t, -1)

    tm_p = _pick_rows(w, o_flat.dtype.itemsize, n_p, tile_budget, tm)
    steps_total = pl.cdiv(n_p, tm_p)
    num_splits = max(1, min(int(num_splits), steps_total))
    sps = pl.cdiv(steps_total, num_splits)
    n_blocks = num_splits * sps
    n_pad_p = n_blocks * tm_p

    # Only the tiny target words get padded; logits are never copied.
    packed = jnp.pad(packed, (0, n_pad_p - n_p), constant_values=-1)
    packed = packed.reshape(n_pad_p, 1)

    last_blk = steps_total - 1

    def logits_map(g, i):
        # Blocks past the real data (num_splits rounding) clamp onto the last
        # real block; their targets are padded -1/255 so they contribute zero.
        return (jnp.minimum(g * sps + i, last_blk), 0)

    def targets_map(g, i):
        return (g * sps + i, 0)

    acc_cols = w if k > 1 else 1

    return pl.pallas_call(
        _make_loss_kernel(k, d),
        out_shape=jax.ShapeDtypeStruct((num_splits, 8, 128), jnp.float32),
        grid_spec=pltpu.PrefetchScalarGridSpec(
            num_scalar_prefetch=0,
            grid=(num_splits, sps),
            in_specs=[
                pl.BlockSpec((tm_p, w), logits_map),
                pl.BlockSpec((tm_p, 1), targets_map),
            ],
            out_specs=pl.BlockSpec((1, 8, 128), lambda g, i: (g, 0, 0)),
            scratch_shapes=[pltpu.VMEM((1, acc_cols), jnp.float32)],
        ),
        compiler_params=pltpu.CompilerParams(
            dimension_semantics=("parallel", "arbitrary"),
            vmem_limit_bytes=vmem_limit,
        ),
    )(o2, packed)


def masked_ce_loss(outputs, targets, output_dim, *, tm=None, num_splits=None):
    """Pallas equivalent of Loss(output_dim)(outputs, targets).

    `tm` (optional) = rows per block of the (possibly lane-packed) logits view.
    """
    d = int(output_dim)
    o_flat = outputs.reshape(-1, d)                   # (N, D) native dtype, no HBM copy
    t = targets.reshape(-1).astype(jnp.int32)         # (N,)
    n = o_flat.shape[0]

    # Lane packing: k tokens per 128-lane row for small power-of-two vocabularies
    # (k limited to 4 so the k target columns byte-pack into one int32 per row).
    k = 1
    if 0 < d < 128 and (d & (d - 1)) == 0:
        k = min(4, 128 // d)
        while k > 1 and n % k:
            k //= 2

    try:
        parts = _loss_parts(o_flat, t, d, k, tm, num_splits)
    except Exception:                                 # conservative fallback path
        if k == 1:
            raise
        parts = _loss_parts(o_flat, t, d, 1, tm, num_splits)

    picked_sum = jnp.sum(parts[:, 0, 0])
    nb_tokens = jnp.sum((t > PAD).astype(jnp.float32))
    # Same divide-by-zero behavior as the PyTorch reference if every target == PAD.
    return -picked_sum / nb_tokens


def _reference_loss(outputs, targets, output_dim):
    o = outputs.reshape(-1, output_dim).astype(jnp.float32)
    t = targets.reshape(-1).astype(jnp.int32)
    mask = (t > PAD).astype(jnp.float32)
    picked = o[jnp.arange(o.shape[0]), t] * mask
    return -jnp.sum(picked) / jnp.sum(mask)


if __name__ == "__main__":
    key = jax.random.PRNGKey(0)
    k1, k2, k3, k4, k5, k6 = jax.random.split(key, 6)

    # Case 1: bf16 logits, D=32 -> lane-packed path (k=4), single block/split.
    batch, seq, dim1 = 2, 8, 32
    out1 = jax.random.normal(k1, (batch, seq, dim1), jnp.float32).astype(jnp.bfloat16)
    tgt1 = jax.random.randint(k2, (batch, seq), 0, dim1, dtype=jnp.int32)
    loss1 = masked_ce_loss(out1, tgt1, dim1)
    jax.block_until_ready(loss1)
    ref1 = _reference_loss(out1, tgt1, dim1)
    assert jnp.allclose(loss1, ref1, rtol=1e-5, atol=1e-5), (loss1, ref1)

    # Case 2: f32 logits, non-power-of-two D and ragged N -> unpacked path with
    # multiple row blocks, a partial last block, 2 splits and clamped tail blocks.
    batch2, seq2, dim2 = 3, 37, 96
    out2 = jax.random.normal(k3, (batch2, seq2, dim2), jnp.float32)
    tgt2 = jax.random.randint(k4, (batch2, seq2), 0, dim2, dtype=jnp.int32)
    loss2 = masked_ce_loss(out2, tgt2, dim2, tm=16, num_splits=2)
    jax.block_until_ready(loss2)
    ref2 = _reference_loss(out2, tgt2, dim2)
    assert jnp.allclose(loss2, ref2, rtol=1e-5, atol=1e-5), (loss2, ref2)

    # Case 3: bf16 logits, D=32, N=256 -> packed path with several sequential
    # blocks, 2 partial-sum splits and explicit PAD tokens being masked out.
    batch3, seq3, dim3 = 4, 64, 32
    out3 = jax.random.normal(k5, (batch3, seq3, dim3), jnp.float32).astype(jnp.bfloat16)
    tgt3 = jax.random.randint(k6, (batch3, seq3), 0, dim3, dtype=jnp.int32)
    tgt3 = tgt3.at[0, :7].set(0)                      # force some PAD tokens
    loss3 = masked_ce_loss(out3, tgt3, dim3, tm=8, num_splits=2)
    jax.block_until_ready(loss3)
    ref3 = _reference_loss(out3, tgt3, dim3)
    assert jnp.allclose(loss3, ref3, rtol=1e-5, atol=1e-5), (loss3, ref3)

    print("KERNEL_OK")
</pallas_src>

<mosaic_0001>
module attributes {stable_mosaic.version = 11 : i64} {
  func.func @kernel(%arg0: i32, %arg1: i32, %arg2: memref<8x128xbf16, #tpu.memory_space<vmem>>, %arg3: memref<8x1xi32, #tpu.memory_space<vmem>>, %arg4: memref<1x8x128xf32, #tpu.memory_space<vmem>>, %arg5: memref<1x128xf32, #tpu.memory_space<vmem>>) attributes {dimension_semantics = [#tpu.dimension_semantics<parallel>, #tpu.dimension_semantics<arbitrary>], iteration_bounds = array<i64: 1, 1>, scalar_prefetch = 0 : i64, scratch_operands = 1 : i64, tpu.core_type = #tpu.core_type<tc>, window_params = [{transform_indices = @transform_0, window_bounds = array<i64: 8, 128>}, {transform_indices = @transform_1, window_bounds = array<i64: 8, 1>}, {transform_indices = @transform_2, window_bounds = array<i64: 1, 8, 128>}]} {
    %c0_i32 = arith.constant 0 : i32
    %0 = arith.cmpi eq, %arg1, %c0_i32 : i32
    %1 = arith.extui %0 : i1 to i32
    %c0_i32_0 = arith.constant 0 : i32
    %2 = arith.cmpi ne, %1, %c0_i32_0 : i32
    scf.if %2 {
      %cst_11 = arith.constant 0.000000e+00 : f32
      %26 = vector.broadcast %cst_11 : f32 to vector<1x128xf32>
      %c0_12 = arith.constant 0 : index
      %c0_13 = arith.constant 0 : index
      %27 = vector.load %arg5[%c0_12, %c0_13] : memref<1x128xf32, #tpu.memory_space<vmem>>, vector<1x128xf32>
      tpu.vector_store %arg5[%c0_12, %c0_13], %26 {strides = array<i32>} : memref<1x128xf32, #tpu.memory_space<vmem>>, vector<1x128xf32>,
    } else {
    }
    %c0 = arith.constant 0 : index
    %c0_1 = arith.constant 0 : index
    %3 = vector.load %arg2[%c0, %c0_1] : memref<8x128xbf16, #tpu.memory_space<vmem>>, vector<8x128xbf16>
    %c0_2 = arith.constant 0 : index
    %c0_3 = arith.constant 0 : index
    %4 = vector.load %arg3[%c0_2, %c0_3] : memref<8x1xi32, #tpu.memory_space<vmem>>, vector<8x1xi32>
    %5 = tpu.iota {dimensions = array<i32: 1>} : vector<8x128xi32>
    %c5_i32 = arith.constant 5 : i32
    %6 = vector.broadcast %c5_i32 : i32 to vector<8x128xi32>
    %7 = arith.shrsi %5, %6 : vector<8x128xi32>
    %c3_i32 = arith.constant 3 : i32
    %8 = vector.broadcast %c3_i32 : i32 to vector<8x128xi32>
    %9 = arith.shli %7, %8 : vector<8x128xi32>
    %10 = vector.broadcast %4 : vector<8x1xi32> to vector<8x128xi32>
    %11 = arith.shrsi %10, %9 : vector<8x128xi32>
    %c255_i32 = arith.constant 255 : i32
    %12 = vector.broadcast %c255_i32 : i32 to vector<8x128xi32>
    %13 = arith.andi %11, %12 : vector<8x128xi32>
    %14 = arith.cmpi eq, %13, %5 : vector<8x128xi32>
    %cst = arith.constant 0.000000e+00 : bf16
    %15 = vector.broadcast %cst : bf16 to vector<8x128xbf16>
    %16 = arith.select %14, %3, %15 : vector<8x128xi1>, vector<8x128xbf16>
    %17 = arith.extf %16 : vector<8x128xbf16> to vector<8x128xf32>
    %c0_4 = arith.constant 0 : index
    %c0_5 = arith.constant 0 : index
    %18 = vector.load %arg5[%c0_4, %c0_5] : memref<1x128xf32, #tpu.memory_space<vmem>>, vector<1x128xf32>
    %cst_6 = arith.constant dense<0.000000e+00> : vector<128xf32>
    %19 = vector.multi_reduction <add>, %17, %cst_6 [0] : vector<8x128xf32> to vector<128xf32>
    %20 = vector.shape_cast %19 : vector<128xf32> to vector<1x128xf32>
    %21 = arith.addf %18, %20 : vector<1x128xf32>
    %c0_7 = arith.constant 0 : index
    %c0_8 = arith.constant 0 : index
    %22 = vector.load %arg5[%c0_7, %c0_8] : memref<1x128xf32, #tpu.memory_space<vmem>>, vector<1x128xf32>
    tpu.vector_store %arg5[%c0_7, %c0_8], %21 {strides = array<i32>} : memref<1x128xf32, #tpu.memory_space<vmem>>, vector<1x128xf32>,
    %c0_i32_9 = arith.constant 0 : i32
    %23 = arith.cmpi eq, %arg1, %c0_i32_9 : i32
    %24 = arith.extui %23 : i1 to i32
    %c0_i32_10 = arith.constant 0 : i32
    %25 = arith.cmpi ne, %24, %c0_i32_10 : i32
    scf.if %25 {
      %c0_11 = arith.constant 0 : index
      %c0_12 = arith.constant 0 : index
      %26 = vector.load %arg5[%c0_11, %c0_12] : memref<1x128xf32, #tpu.memory_space<vmem>>, vector<1x128xf32>
      %27 = vector.shape_cast %26 : vector<1x128xf32> to vector<1x1x128xf32>
      %cst_13 = arith.constant dense<0.000000e+00> : vector<1xf32>
      %28 = vector.multi_reduction <add>, %27, %cst_13 [1, 2] : vector<1x1x128xf32> to vector<1xf32>
      %29 = vector.shape_cast %28 : vector<1xf32> to vector<1x1x1xf32>
      %30 = vector.extract %29[0, 0, 0] : f32 from vector<1x1x1xf32>
      %31 = tpu.iota {dimensions = array<i32: 0>} : vector<8x128xi32>
      %32 = tpu.iota {dimensions = array<i32: 1>} : vector<8x128xi32>
      %c0_i32_14 = arith.constant 0 : i32
      %33 = vector.broadcast %c0_i32_14 : i32 to vector<8x128xi32>
      %34 = arith.cmpi eq, %31, %33 : vector<8x128xi32>
      %c0_i32_15 = arith.constant 0 : i32
      %35 = vector.broadcast %c0_i32_15 : i32 to vector<8x128xi32>
      %36 = arith.cmpi eq, %32, %35 : vector<8x128xi32>
      %37 = arith.andi %34, %36 : vector<8x128xi1>
      %cst_16 = arith.constant 0.000000e+00 : f32
      %38 = vector.broadcast %30 : f32 to vector<8x128xf32>
      %39 = vector.broadcast %cst_16 : f32 to vector<8x128xf32>
      %40 = arith.select %37, %38, %39 : vector<8x128xi1>, vector<8x128xf32>
      %c0_17 = arith.constant 0 : index
      %c0_18 = arith.constant 0 : index
      %c0_19 = arith.constant 0 : index
      %41 = vector.load %arg4[%c0_17, %c0_18, %c0_19] : memref<1x8x128xf32, #tpu.memory_space<vmem>>, vector<1x8x128xf32>
      %42 = vector.shape_cast %41 : vector<1x8x128xf32> to vector<8x128xf32>
      %43 = vector.shape_cast %40 : vector<8x128xf32> to vector<1x8x128xf32>
      tpu.vector_store %arg4[%c0_17, %c0_18, %c0_19], %43 {strides = array<i32>} : memref<1x8x128xf32, #tpu.memory_space<vmem>>, vector<1x8x128xf32>,
    } else {
    }
    return
  }
  func.func @transform_0(%arg0: i32, %arg1: i32) -> (i32, i32) {
    %c1_i32 = arith.constant 1 : i32
    %0 = arith.muli %arg0, %c1_i32 : i32
    %1 = arith.addi %0, %arg1 : i32
    %c0_i32 = arith.constant 0 : i32
    %2 = arith.minsi %1, %c0_i32 : i32
    %c0_i32_0 = arith.constant 0 : i32
    %c0_i32_1 = arith.constant 0 : i32
    return %2, %c0_i32_0 : i32, i32
  }
  func.func @transform_1(%arg0: i32, %arg1: i32) -> (i32, i32) {
    %c1_i32 = arith.constant 1 : i32
    %0 = arith.muli %arg0, %c1_i32 : i32
    %1 = arith.addi %0, %arg1 : i32
    %c0_i32 = arith.constant 0 : i32
    %c0_i32_0 = arith.constant 0 : i32
    return %1, %c0_i32 : i32, i32
  }
  func.func @transform_2(%arg0: i32, %arg1: i32) -> (i32, i32, i32) {
    %c0_i32 = arith.constant 0 : i32
    %c0_i32_0 = arith.constant 0 : i32
    %c0_i32_1 = arith.constant 0 : i32
    return %arg0, %c0_i32, %c0_i32_0 : i32, i32, i32
  }
}

module attributes {stable_mosaic.version = 11 : i64} {
  func.func @kernel(%arg0: i32, %arg1: i32, %arg2: memref<16x32xbf16, #tpu.memory_space<vmem>>, %arg3: memref<16x1xi32, #tpu.memory_space<vmem>>, %arg4: memref<1x8x128xf32, #tpu.memory_space<vmem>>, %arg5: memref<1x1xf32, #tpu.memory_space<vmem>>) attributes {dimension_semantics = [#tpu.dimension_semantics<parallel>, #tpu.dimension_semantics<arbitrary>], iteration_bounds = array<i64: 1, 1>, scalar_prefetch = 0 : i64, scratch_operands = 1 : i64, tpu.core_type = #tpu.core_type<tc>, window_params = [{transform_indices = @transform_0, window_bounds = array<i64: 16, 32>}, {transform_indices = @transform_1, window_bounds = array<i64: 16, 1>}, {transform_indices = @transform_2, window_bounds = array<i64: 1, 8, 128>}]} {
    %c0_i32 = arith.constant 0 : i32
    %0 = arith.cmpi eq, %arg1, %c0_i32 : i32
    %1 = arith.extui %0 : i1 to i32
    %c0_i32_0 = arith.constant 0 : i32
    %2 = arith.cmpi ne, %1, %c0_i32_0 : i32
    scf.if %2 {
      %cst_12 = arith.constant 0.000000e+00 : f32
      %23 = vector.broadcast %cst_12 : f32 to vector<1x1xf32>
      %c0_13 = arith.constant 0 : index
      %c0_14 = arith.constant 0 : index
      %24 = vector.load %arg5[%c0_13, %c0_14] : memref<1x1xf32, #tpu.memory_space<vmem>>, vector<1x1xf32>
      tpu.vector_store %arg5[%c0_13, %c0_14], %23 {strides = array<i32>} : memref<1x1xf32, #tpu.memory_space<vmem>>, vector<1x1xf32>,
    } else {
    }
    %c0 = arith.constant 0 : index
    %c0_1 = arith.constant 0 : index
    %3 = vector.load %arg2[%c0, %c0_1] : memref<16x32xbf16, #tpu.memory_space<vmem>>, vector<16x32xbf16>
    %c0_2 = arith.constant 0 : index
    %c0_3 = arith.constant 0 : index
    %4 = vector.load %arg3[%c0_2, %c0_3] : memref<16x1xi32, #tpu.memory_space<vmem>>, vector<16x1xi32>
    %5 = tpu.iota {dimensions = array<i32: 1>} : vector<16x32xi32>
    %6 = vector.broadcast %4 : vector<16x1xi32> to vector<16x32xi32>
    %7 = arith.cmpi eq, %6, %5 : vector<16x32xi32>
    %cst = arith.constant 0.000000e+00 : bf16
    %8 = vector.broadcast %cst : bf16 to vector<16x32xbf16>
    %9 = arith.select %7, %3, %8 : vector<16x32xi1>, vector<16x32xbf16>
    %10 = arith.extf %9 : vector<16x32xbf16> to vector<16x32xf32>
    %cst_4 = arith.constant dense<0.000000e+00> : vector<16xf32>
    %11 = vector.multi_reduction <add>, %10, %cst_4 [1] : vector<16x32xf32> to vector<16xf32>
    %12 = vector.shape_cast %11 : vector<16xf32> to vector<16x1xf32>
    %13 = arith.truncf %12 : vector<16x1xf32> to vector<16x1xbf16>
    %c0_5 = arith.constant 0 : index
    %c0_6 = arith.constant 0 : index
    %14 = vector.load %arg5[%c0_5, %c0_6] : memref<1x1xf32, #tpu.memory_space<vmem>>, vector<1x1xf32>
    %15 = arith.extf %13 : vector<16x1xbf16> to vector<16x1xf32>
    %cst_7 = arith.constant dense<0.000000e+00> : vector<1xf32>
    %16 = vector.multi_reduction <add>, %15, %cst_7 [0] : vector<16x1xf32> to vector<1xf32>
    %17 = vector.shape_cast %16 : vector<1xf32> to vector<1x1xf32>
    %18 = arith.addf %14, %17 : vector<1x1xf32>
    %c0_8 = arith.constant 0 : index
    %c0_9 = arith.constant 0 : index
    %19 = vector.load %arg5[%c0_8, %c0_9] : memref<1x1xf32, #tpu.memory_space<vmem>>, vector<1x1xf32>
    tpu.vector_store %arg5[%c0_8, %c0_9], %18 {strides = array<i32>} : memref<1x1xf32, #tpu.memory_space<vmem>>, vector<1x1xf32>,
    %c0_i32_10 = arith.constant 0 : i32
    %20 = arith.cmpi eq, %arg1, %c0_i32_10 : i32
    %21 = arith.extui %20 : i1 to i32
    %c0_i32_11 = arith.constant 0 : i32
    %22 = arith.cmpi ne, %21, %c0_i32_11 : i32
    scf.if %22 {
      %c0_12 = arith.constant 0 : index
      %c0_13 = arith.constant 0 : index
      %23 = vector.load %arg5[%c0_12, %c0_13] : memref<1x1xf32, #tpu.memory_space<vmem>>, vector<1x1xf32>
      %24 = vector.shape_cast %23 : vector<1x1xf32> to vector<1x1x1xf32>
      %cst_14 = arith.constant dense<0.000000e+00> : vector<1xf32>
      %25 = vector.multi_reduction <add>, %24, %cst_14 [1, 2] : vector<1x1x1xf32> to vector<1xf32>
      %26 = vector.shape_cast %25 : vector<1xf32> to vector<1x1x1xf32>
      %27 = vector.extract %26[0, 0, 0] : f32 from vector<1x1x1xf32>
      %28 = tpu.iota {dimensions = array<i32: 0>} : vector<8x128xi32>
      %29 = tpu.iota {dimensions = array<i32: 1>} : vector<8x128xi32>
      %c0_i32_15 = arith.constant 0 : i32
      %30 = vector.broadcast %c0_i32_15 : i32 to vector<8x128xi32>
      %31 = arith.cmpi eq, %28, %30 : vector<8x128xi32>
      %c0_i32_16 = arith.constant 0 : i32
      %32 = vector.broadcast %c0_i32_16 : i32 to vector<8x128xi32>
      %33 = arith.cmpi eq, %29, %32 : vector<8x128xi32>
      %34 = arith.andi %31, %33 : vector<8x128xi1>
      %cst_17 = arith.constant 0.000000e+00 : f32
      %35 = vector.broadcast %27 : f32 to vector<8x128xf32>
      %36 = vector.broadcast %cst_17 : f32 to vector<8x128xf32>
      %37 = arith.select %34, %35, %36 : vector<8x128xi1>, vector<8x128xf32>
      %c0_18 = arith.constant 0 : index
      %c0_19 = arith.constant 0 : index
      %c0_20 = arith.constant 0 : index
      %38 = vector.load %arg4[%c0_18, %c0_19, %c0_20] : memref<1x8x128xf32, #tpu.memory_space<vmem>>, vector<1x8x128xf32>
      %39 = vector.shape_cast %38 : vector<1x8x128xf32> to vector<8x128xf32>
      %40 = vector.shape_cast %37 : vector<8x128xf32> to vector<1x8x128xf32>
      tpu.vector_store %arg4[%c0_18, %c0_19, %c0_20], %40 {strides = array<i32>} : memref<1x8x128xf32, #tpu.memory_space<vmem>>, vector<1x8x128xf32>,
    } else {
    }
    return
  }
  func.func @transform_0(%arg0: i32, %arg1: i32) -> (i32, i32) {
    %c1_i32 = arith.constant 1 : i32
    %0 = arith.muli %arg0, %c1_i32 : i32
    %1 = arith.addi %0, %arg1 : i32
    %c0_i32 = arith.constant 0 : i32
    %2 = arith.minsi %1, %c0_i32 : i32
    %c0_i32_0 = arith.constant 0 : i32
    %c0_i32_1 = arith.constant 0 : i32
    return %2, %c0_i32_0 : i32, i32
  }
  func.func @transform_1(%arg0: i32, %arg1: i32) -> (i32, i32) {
    %c1_i32 = arith.constant 1 : i32
    %0 = arith.muli %arg0, %c1_i32 : i32
    %1 = arith.addi %0, %arg1 : i32
    %c0_i32 = arith.constant 0 : i32
    %c0_i32_0 = arith.constant 0 : i32
    return %1, %c0_i32 : i32, i32
  }
  func.func @transform_2(%arg0: i32, %arg1: i32) -> (i32, i32, i32) {
    %c0_i32 = arith.constant 0 : i32
    %c0_i32_0 = arith.constant 0 : i32
    %c0_i32_1 = arith.constant 0 : i32
    return %arg0, %c0_i32, %c0_i32_0 : i32, i32, i32
  }
}

</mosaic_0001>

<bundles_post_ra>
// kernel: tpu_custom_call.1
= control target key start
LH: loop header
LB: loop body
LE: loop exit
PB: predicated region body
PF: predicated region fallthrough
CT: control target
= control target key end

     0   :  { %v193_v1 = vmov 0   ;;  %v194_v2 = vmov 0.0   ;;  %s223_s0 = inlined_call_operand.vmem [shape: bf16[4,128], index: 0, kind: input, shape index: {}]   ;;  %s224_s1 = inlined_call_operand.vmem [shape: s32[8,1], index: 1, kind: input, shape index: {}]   ;;  %s225_s2 = inlined_call_operand.hbm [shape: f32[1,8,128], index: 2, kind: output, shape index: {}]  }
   0x1   :  { %v80_v0 = vld [vmem:[%s224_s1] sm:$0xff]  ;;  %170 = vset.pattern.permute.xlu0 %v193_v1  ;;  %77 = vst [vmem:[#allocation2] sm:$0x1] %v194_v2 }
   0x2   :  { %7 = vsyncpa [#allocation4], 0  ;;  %86 = vperm.xlu0 %170, %v80_v0   ;;  %v81_v3 = vlaneseq  ;;  %v78_v13 = vld [vmem:[%s223_s0] sm:$0x3]  ;;  %v79_v15 = vld [vmem:[%s223_s0 + $0x2] sm:$0x3] }
   0x3   :  { %vm120_vm4 = vcmask 1040384   ;;  %s195_s0 = smov [#allocation3]  }
   0x4   :  { %v82_v4 = vand.u32 127, %v81_v3  ;;  %v132_v39 = vshrl.u32 %v81_v3, 7  ;;  %s145_s14 = sshll.u32 %s195_s0, 4  ;;  %s146_s14 = int_to_ptr.vmem [resolvable:$true] %s145_s14 }
   0x5   :  { %s171_s16 = scalar_lea.vmem %s146_s14, 128  ;;  %p176_p1 = scmp.lt.s32.totalorder %s146_s14, %s146_s14 }
   0x6   :  { %v83_v5 = vshra.s32 %v82_v4, 5  ;;  %vm133_vm5 = vcmp.eq.s32.totalorder %v132_v39, 0  ;;  %vm134_vm6 = vcmp.eq.s32.totalorder %v82_v4, 0  ;;  %p172_p0 = scmp.ne.s32.totalorder %s146_s14, %s171_s16  ;;  %p177_p2 = scmp.lt.s32.totalorder %s171_s16, %s171_s16 }
   0x7   :  { %vm135_vm7 = vmand %vm133_vm5, %vm134_vm6 }
   0x8   :  { %v84_v6 = vshll.u32 %v83_v5, 3  ;;  %v103_v27 = vld [vmem:[#allocation2] sm:$0x1]  ;;  %p178_p3 = por %p177_p2, %p176_p1 }
   0xa   :  { %p179_p4 = pnand %p178_p3, %p172_p0 }
  0x7d   :  { %v87_v7 = vpop.permute.xlu0 %86 }
  0x7e   :  { %v88_v8 = vshra.s32 %v87_v7, %v84_v6 }
  0x80   :  { %v89_v9 = vand.u32 255, %v88_v8 }
  0x82   :  { %vm90_vm0 = vcmp.eq.s32.totalorder %v89_v9, %v82_v4 }
  0x83   :  { %v91_v10 = vsel %vm90_vm0, 1, %v193_v1 }
  0x84   :  { %v92_v11 = vcombine.high %v91_v10, %v91_v10  ;;  %v95_v12 = vpack.c.b16 %v91_v10, %v91_v10 }
  0x86   :  { %vm93_vm1 = vcmp.ne.s32.totalorder %v92_v11, 0  ;;  %vm97_vm2 = vcmp.ne.s16.totalorder %v95_v12, 0 }
  0x87   :  { %v94_v14 = vsel %vm93_vm1, 1, %v193_v1  ;;  %v99_v17 = vsel %vm97_vm2, %v78_v13, 0 }
  0x88   :  { %v96_v16 = vpack.c.b16 %v94_v14, %v94_v14  ;;  %v101_v19 = vunpack.c.l.bf16 %v99_v17 }
  0x8a   :  { %vm98_vm3 = vcmp.ne.s16.totalorder %v96_v16, 0 }
  0x8b   :  { %v100_v18 = vsel %vm98_vm3, %v79_v15, 0 }
  0x8c   :  { %v102_v20 = vunpack.c.l.bf16 %v100_v18 }
  0x8e   :  { %v106_v21 = vcombine.low %v101_v19, %v102_v20 }
  0x90   :  { %v108_v22 = vrot.slane %v106_v21, 4 }
  0x92   :  { %v109_v23 = vadd.f32 %v108_v22, %v106_v21 }
  0x94   :  { %v110_v24 = vrot.slane %v109_v23, 2 }
  0x96   :  { %v111_v25 = vadd.f32 %v110_v24, %v109_v23 }
  0x98   :  { %v112_v26 = vrot.slane %v111_v25, 1 }
  0x9a   :  { %v113_v28 = vadd.f32 %v112_v26, %v111_v25 }
  0x9c   :  { %v114_v29 = vadd.f32 %v113_v28, %v103_v27 }
  0x9e   :  { %115 = vst [vmem:[#allocation2] sm:$0x1] %v114_v29 }
  0xa5   :  { %v119_v30 = vld [vmem:[#allocation2] sm:$0x1] }
  0xa6   :  { %v121_v31 = vsel %vm120_vm4, %v119_v30, 0.0 }
  0xa7   :  { %122 = vadd.xlane.f32.xlu0 %v121_v31 }
 0x130   :  { %v123_v32 = vpop.xlane.xlu0 %122 }
 0x131   :  { %v124_v33 = vrot.slane %v123_v32, 4 }
 0x133   :  { %v125_v34 = vadd.f32 %v124_v33, %v123_v32 }
 0x135   :  { %v126_v35 = vrot.slane %v125_v34, 2 }
 0x137   :  { %v127_v36 = vadd.f32 %v126_v35, %v125_v34 }
 0x139   :  { %v128_v37 = vrot.slane %v127_v36, 1 }
 0x13b   :  { %v129_v38 = vadd.f32 %v128_v37, %v127_v36 }
 0x13d   :  { %165 = vpush %v129_v38 }
 0x16e   :  { %s166_s15 = spop %165 }
 0x16f   :  { %v136_v40 = vstv %s166_s15 }
 0x170   :  { %v137_v41 = vsel %vm135_vm7, %v136_v40, 0.0 }
 0x171   :  { %138 = vst [vmem:[#allocation3] sm:$0xff] %v137_v41 }
 0x172   :  { %182 = shalt.err (!%p179_p4)
}
 0x173   :  { %148 = dma.vmem_to_hbm [thread:$0]  %s146_s14, 128, %s225_s2, [#allocation4]  }
 0x174   :  { %191 = dma.done.wait [#allocation4], 128  }
 0x175   :  { %192 = vsyncadd [#allocation4], 4294967168 }
 0x176   :  { %152 = vsyncpa [#allocation4], 1 }

// kernel: tpu_custom_call.1
= control target key start
LH: loop header
LB: loop body
LE: loop exit
PB: predicated region body
PF: predicated region fallthrough
CT: control target
= control target key end

     0   :  { %v182_v1 = vmov 0   ;;  %s217_s0 = inlined_call_operand.vmem [shape: bf16[16,32], index: 0, kind: input, shape index: {}]   ;;  %s218_s1 = inlined_call_operand.vmem [shape: s32[16,1], index: 1, kind: input, shape index: {}]   ;;  %s219_s2 = inlined_call_operand.hbm [shape: f32[1,8,128], index: 2, kind: output, shape index: {}]  }
   0x1   :  { %v75_v0 = vld [vmem:[%s218_s1] sm:$0xff]  ;;  %159 = vset.pattern.permute.xlu0 %v182_v1 }
   0x2   :  { %7 = vsyncpa [#allocation4], 0  ;;  %80 = vperm.xlu0 %159, %v75_v0   ;;  %v76_v2 = vld [vmem:[%s218_s1 + $0x8] sm:$0xff]  ;;  %v77_v3 = vlaneseq  ;;  %v73_v6 = vld [vmem:[%s217_s0] sm:$0xf]  ;;  %vm93_vm2 = vcmask 261120  }
   0x3   :  { %v74_v9 = vld [vmem:[%s217_s0 + $0x4] sm:$0xf]  ;;  %vm71_vm5 = vcmask 0   ;;  %v183_v15 = vmov 0.0   ;;  %s184_s0 = smov [#allocation3]  }
   0x4   :  { %v78_v4 = vand.u32 127, %v77_v3  ;;  %72 = vst.msk [vmem:[#allocation2] sm:$0x1] %vm71_vm5, %v183_v15  ;;  %v121_v31 = vshrl.u32 %v77_v3, 7  ;;  %s134_s1 = sshll.u32 %s184_s0, 4  ;;  %s135_s1 = int_to_ptr.vmem [resolvable:$true] %s134_s1 }
   0x5   :  { %s160_s18 = scalar_lea.vmem %s135_s1, 128  ;;  %p165_p1 = scmp.lt.s32.totalorder %s135_s1, %s135_s1 }
   0x6   :  { %83 = vperm.xlu0 %159, %v76_v2   ;;  %vm122_vm6 = vcmp.eq.s32.totalorder %v121_v31, 0  ;;  %vm123_vm7 = vcmp.eq.s32.totalorder %v78_v4, 0  ;;  %p161_p0 = scmp.ne.s32.totalorder %s135_s1, %s160_s18  ;;  %p166_p2 = scmp.lt.s32.totalorder %s160_s18, %s160_s18 }
   0x7   :  { %vm124_vm8 = vmand %vm122_vm6, %vm123_vm7 }
   0x8   :  { %p167_p3 = por %p166_p2, %p165_p1 }
   0xa   :  { %p168_p4 = pnand %p167_p3, %p161_p0 }
   0xb   :  { %v101_v27 = vld [vmem:[#allocation2] sm:$0x1] }
  0x7d   :  { %v81_v5 = vpop.permute.xlu0 %80 }
  0x7e   :  { %vm85_vm0 = vcmp.eq.s32.totalorder %v81_v5, %v78_v4 }
  0x7f   :  { %vm87_vm1 = vmpackc.low %vm85_vm0, %vm85_vm0 }
  0x80   :  { %v89_v7 = vsel %vm87_vm1, %v73_v6, 0 }
  0x81   :  { %v84_v8 = vpop.permute.xlu0 %83  ;;  %v91_v10 = vunpack.c.l.bf16 %v89_v7 }
  0x82   :  { %vm86_vm3 = vcmp.eq.s32.totalorder %v84_v8, %v78_v4 }
  0x83   :  { %vm88_vm4 = vmpackc.low %vm86_vm3, %vm86_vm3  ;;  %v94_v11 = vsel %vm93_vm2, %v91_v10, 0.0 }
  0x84   :  { %v90_v12 = vsel %vm88_vm4, %v74_v9, 0  ;;  %95 = vadd.xlane.f32.xlu1 %v94_v11 }
  0x85   :  { %v92_v13 = vunpack.c.l.bf16 %v90_v12 }
  0x87   :  { %v97_v14 = vsel %vm93_vm2, %v92_v13, 0.0 }
  0x88   :  { %98 = vadd.xlane.f32.xlu1 %v97_v14 }
 0x10d   :  { %v96_v16 = vpop.xlane.xlu1 %95 }
 0x111   :  { %v99_v17 = vpop.xlane.xlu1 %98 }
 0x112   :  { %v100_v18 = vpack.c.bf16 %v99_v17, %v96_v16 }
 0x114   :  { %v102_v19 = vunpack.c.l.bf16 %v100_v18  ;;  %v103_v20 = vunpack.c.h.bf16 %v100_v18 }
 0x116   :  { %v104_v21 = vadd.f32 %v103_v20, %v102_v19 }
 0x118   :  { %v105_v22 = vrot.slane %v104_v21, 4 }
 0x11a   :  { %v106_v23 = vadd.f32 %v105_v22, %v104_v21 }
 0x11c   :  { %v107_v24 = vrot.slane %v106_v23, 2 }
 0x11e   :  { %v108_v25 = vadd.f32 %v107_v24, %v106_v23 }
 0x120   :  { %v109_v26 = vrot.slane %v108_v25, 1 }
 0x122   :  { %v110_v28 = vadd.f32 %v109_v26, %v108_v25 }
 0x124   :  { %v111_v29 = vadd.f32 %v110_v28, %v101_v27 }
 0x126   :  { %113 = vst.msk [vmem:[#allocation2] sm:$0x1] %vm71_vm5, %v111_v29 }
 0x12d   :  { %v117_v30 = vld [vmem:[#allocation2] sm:$0x1] }
 0x12e   :  { %154 = vpush %v117_v30 }
 0x15f   :  { %s155_s17 = spop %154 }
 0x160   :  { %v125_v32 = vstv %s155_s17 }
 0x161   :  { %v126_v33 = vsel %vm124_vm8, %v125_v32, 0.0 }
 0x162   :  { %127 = vst [vmem:[#allocation3] sm:$0xff] %v126_v33 }
 0x163   :  { %171 = shalt.err (!%p168_p4)
}
 0x164   :  { %137 = dma.vmem_to_hbm [thread:$0]  %s135_s1, 128, %s219_s2, [#allocation4]  }
 0x165   :  { %180 = dma.done.wait [#allocation4], 128  }
 0x166   :  { %181 = vsyncadd [#allocation4], 4294967168 }
 0x167   :  { %141 = vsyncpa [#allocation4], 1 }

</bundles_post_ra>
